<compile_context>
chip_gen: v7x
topology: tpu7x:2x2x1
jax: 0.10.0
libtpu: 0.0.40
codegen_flags: <defaults>
</compile_context>

<pallas_src>
import jax
import jax.numpy as jnp
from jax.experimental import pallas as pl
from jax.experimental.pallas import tpu as pltpu


def _round_up(x, m):
    return (x + m - 1) // m * m


def _divisors(n):
    divs = []
    i = 1
    while i * i <= n:
        if n % i == 0:
            divs.append(i)
            if i != n // i:
                divs.append(n // i)
        i += 1
    return sorted(divs)


def _pick_tile_hw(N, C_in, C_out, HW, itemsize):
    """Byte-budgeted spatial tile.  Returns (tile_hw, HW_pad)."""
    # Sublane-padded channel counts: f32 -> 8, bf16 -> 16, int8/fp8 -> 32.
    sub = {4: 8, 2: 16, 1: 32}.get(itemsize, 8)
    cin_p = _round_up(C_in, sub)
    cout_p = _round_up(C_out, sub)

    # ~4 MiB per grid step shared between the input and output tile.  This is
    # large enough to reach ~85%+ of the HBM roofline while keeping the
    # double-buffered working set well inside v7x's 64 MiB/TC VMEM.
    target_bytes = 4 * 1024 * 1024
    per_col_bytes = (cin_p + cout_p) * itemsize
    budget_cols = max(128, (target_bytes // per_col_bytes) // 128 * 128)

    # v7x has 2 TensorCores: make sure a single-image call still produces a
    # multi-block grid so both cores get work.
    min_blocks = 2 if N == 1 else 1

    if HW % 128 == 0:
        # Pick a tile that exactly divides HW -> no pad, no output slice.
        units = HW // 128
        cands = [d * 128 for d in _divisors(units) if d * 128 <= budget_cols]
        if not cands:
            cands = [128]
        good = [t for t in cands if N * (HW // t) >= min_blocks]
        tile_hw = max(good) if good else max(cands)
        return tile_hw, HW

    # Ragged spatial extent (W not a multiple of 128): fall back to the
    # pad-then-slice path.  TODO(synk): handle the ragged tail in-kernel with a
    # masked pltpu.store to avoid the extra HBM round trip.
    hw128 = _round_up(HW, 128)
    tile_hw = min(budget_cols, hw128)
    hw_pad = _round_up(HW, tile_hw)
    return tile_hw, hw_pad


def _conv1x1_kernel(x_ref, w_ref, b_ref, o_ref):
    # x_ref: (1, C_in, tile_hw)   w_ref: (C_out, C_in)
    # b_ref: (C_out, 1)           o_ref: (1, C_out, tile_hw)
    # Lane-dense matmul over the spatial axis; f32 accumulation on the MXU
    # (MXU utilization is irrelevant here -- the kernel is HBM-bound).
    acc = jnp.dot(w_ref[...], x_ref[0], preferred_element_type=jnp.float32)
    o_ref[0] = (acc + b_ref[...]).astype(o_ref.dtype)


@jax.jit
def out_layer_forward(x_nchw, weight, bias):
    """1x1 Conv2d forward (== PyTorch nn.Conv2d(C_in, C_out, kernel_size=1)).

    x_nchw : (N, C_in, H, W)
    weight : (C_out, C_in, 1, 1)   (PyTorch Conv2d layout)
    bias   : (C_out,)
    returns: (N, C_out, H, W)
    """
    N, C_in, H, W = x_nchw.shape
    C_out = weight.shape[0]
    HW = H * W
    dt = x_nchw.dtype
    itemsize = jnp.dtype(dt).itemsize

    tile_hw, HW_pad = _pick_tile_hw(N, C_in, C_out, HW, itemsize)

    # Normally a free reshape (no relayout when W is a multiple of 128 or the
    # copy fuses); verified via lowered HLO for the shapes we care about.
    x_rows = x_nchw.reshape(N, C_in, HW)
    if HW_pad != HW:
        x_rows = jnp.pad(x_rows, ((0, 0), (0, 0), (0, HW_pad - HW)))

    w_mat = weight.reshape(C_out, C_in)     # (C_out, C_in)
    b_col = bias.reshape(C_out, 1)          # broadcasts over lanes

    grid = (N, HW_pad // tile_hw)

    # VMEM budget: double-buffered (sublane-padded) input + output tiles plus
    # resident weight/bias, with headroom.  Capped at 48 MiB -> safe on v7x's
    # 64 MiB/TC, and well under v5e/v6e physical VMEM.
    sub = {4: 8, 2: 16, 1: 32}.get(itemsize, 8)
    cin_p = _round_up(C_in, sub)
    cout_p = _round_up(C_out, sub)
    working_set = 2 * (cin_p + cout_p) * tile_hw * itemsize \
        + 2 * (cout_p * _round_up(C_in, 128) + cout_p * 128) * itemsize
    vmem_limit = int(min(max(2 * working_set + (4 << 20), 16 << 20), 48 << 20))

    cost = pl.CostEstimate(
        flops=2 * N * HW * C_in * C_out,
        transcendentals=0,
        bytes_accessed=itemsize * (N * HW_pad * cin_p + N * HW_pad * cout_p
                                   + cout_p * C_in + C_out),
    )

    out_rows = pl.pallas_call(
        _conv1x1_kernel,
        out_shape=jax.ShapeDtypeStruct((N, C_out, HW_pad), dt),
        grid_spec=pltpu.PrefetchScalarGridSpec(
            num_scalar_prefetch=0,
            grid=grid,
            in_specs=[
                # (1, C_in, tile_hw): C_in is the full dim, tile_hw lane-dense.
                pl.BlockSpec((1, C_in, tile_hw), lambda n, j: (n, 0, j)),
                # Weight / bias: tiny, resident for the whole grid.
                pl.BlockSpec((C_out, C_in), lambda n, j: (0, 0)),
                pl.BlockSpec((C_out, 1), lambda n, j: (0, 0)),
            ],
            out_specs=pl.BlockSpec((1, C_out, tile_hw), lambda n, j: (n, 0, j)),
        ),
        compiler_params=pltpu.CompilerParams(
            # Both axes are independent -> megacore / dual-TC can shard them.
            dimension_semantics=("parallel", "parallel"),
            vmem_limit_bytes=vmem_limit,
        ),
        cost_estimate=cost,
    )(x_rows, w_mat, b_col)

    if HW_pad != HW:
        out_rows = out_rows[:, :, :HW]
    # Free reshape back to NCHW.
    return out_rows.reshape(N, C_out, H, W)


if __name__ == "__main__":
    # Small shapes consistent with the module's forward.
    N, C_in, H, W = 2, 4, 16, 16
    C_out = 3

    key = jax.random.PRNGKey(0)
    kx, kw, kb = jax.random.split(key, 3)

    x = jax.random.normal(kx, (N, C_in, H, W), dtype=jnp.float32)
    # Deterministic parameter init (roughly matches PyTorch's uniform fan-in init).
    bound = 1.0 / (C_in ** 0.5)
    weight = jax.random.uniform(kw, (C_out, C_in, 1, 1), jnp.float32, -bound, bound)
    bias = jax.random.uniform(kb, (C_out,), jnp.float32, -bound, bound)

    y = out_layer_forward(x, weight, bias)
    y = jax.block_until_ready(y)

    # Pure-JAX reference: 1x1 conv == channel matmul.
    ref = jnp.einsum("nchw,oc->nohw", x, weight.reshape(C_out, C_in)) \
          + bias.reshape(1, C_out, 1, 1)

    assert y.shape == (N, C_out, H, W)
    assert jnp.allclose(y, ref, atol=1e-5, rtol=1e-5)
    print("KERNEL_OK")
</pallas_src>

<mosaic_0001>
module attributes {stable_mosaic.version = 11 : i64} {
  func.func @_conv1x1_kernel(%arg0: i32, %arg1: i32, %arg2: memref<1x4x256xf32, #tpu.memory_space<vmem>>, %arg3: memref<3x4xf32, #tpu.memory_space<vmem>>, %arg4: memref<3x1xf32, #tpu.memory_space<vmem>>, %arg5: memref<1x3x256xf32, #tpu.memory_space<vmem>>) attributes {dimension_semantics = [#tpu.dimension_semantics<parallel>, #tpu.dimension_semantics<parallel>], iteration_bounds = array<i64: 2, 1>, scalar_prefetch = 0 : i64, scratch_operands = 0 : i64, tpu.core_type = #tpu.core_type<tc>, window_params = [{transform_indices = @transform_0, window_bounds = array<i64: 1, 4, 256>}, {pipeline_mode = #tpu.pipeline_mode<synchronous>, transform_indices = @transform_1, window_bounds = array<i64: 3, 4>}, {pipeline_mode = #tpu.pipeline_mode<synchronous>, transform_indices = @transform_2, window_bounds = array<i64: 3, 1>}, {transform_indices = @transform_3, window_bounds = array<i64: 1, 3, 256>}]} {
    %c0 = arith.constant 0 : index
    %c0_0 = arith.constant 0 : index
    %0 = vector.load %arg3[%c0, %c0_0] : memref<3x4xf32, #tpu.memory_space<vmem>>, vector<3x4xf32>
    %c0_1 = arith.constant 0 : index
    %c0_2 = arith.constant 0 : index
    %c0_3 = arith.constant 0 : index
    %1 = vector.load %arg2[%c0_1, %c0_2, %c0_3] : memref<1x4x256xf32, #tpu.memory_space<vmem>>, vector<1x4x256xf32>
    %2 = vector.shape_cast %1 : vector<1x4x256xf32> to vector<4x256xf32>
    %cst = arith.constant dense<0.000000e+00> : vector<3x256xf32>
    %3 = tpu.matmul %0, %2, %cst {dimension_numbers = #tpu.dot_dimension_numbers<[1], [0], [0], [1], [0, 0, 1, 1], [], []>} : vector<3x4xf32>, vector<4x256xf32>, vector<3x256xf32> -> vector<3x256xf32>
    %c0_4 = arith.constant 0 : index
    %c0_5 = arith.constant 0 : index
    %4 = vector.load %arg4[%c0_4, %c0_5] : memref<3x1xf32, #tpu.memory_space<vmem>>, vector<3x1xf32>
    %5 = vector.broadcast %4 : vector<3x1xf32> to vector<3x256xf32>
    %6 = arith.addf %3, %5 : vector<3x256xf32>
    %c0_6 = arith.constant 0 : index
    %c0_7 = arith.constant 0 : index
    %c0_8 = arith.constant 0 : index
    %7 = vector.load %arg5[%c0_6, %c0_7, %c0_8] : memref<1x3x256xf32, #tpu.memory_space<vmem>>, vector<1x3x256xf32>
    %8 = vector.shape_cast %7 : vector<1x3x256xf32> to vector<3x256xf32>
    %9 = vector.shape_cast %6 : vector<3x256xf32> to vector<1x3x256xf32>
    tpu.vector_store %arg5[%c0_6, %c0_7, %c0_8], %9 {strides = array<i32>} : memref<1x3x256xf32, #tpu.memory_space<vmem>>, vector<1x3x256xf32>,
    return
  }
  func.func @transform_0(%arg0: i32, %arg1: i32) -> (i32, i32, i32) {
    %c0_i32 = arith.constant 0 : i32
    %c0_i32_0 = arith.constant 0 : i32
    return %arg0, %c0_i32, %arg1 : i32, i32, i32
  }
  func.func @transform_1(%arg0: i32, %arg1: i32) -> (i32, i32) {
    %c0_i32 = arith.constant 0 : i32
    %c0_i32_0 = arith.constant 0 : i32
    %c0_i32_1 = arith.constant 0 : i32
    return %c0_i32, %c0_i32_0 : i32, i32
  }
  func.func @transform_2(%arg0: i32, %arg1: i32) -> (i32, i32) {
    %c0_i32 = arith.constant 0 : i32
    %c0_i32_0 = arith.constant 0 : i32
    %c0_i32_1 = arith.constant 0 : i32
    return %c0_i32, %c0_i32_0 : i32, i32
  }
  func.func @transform_3(%arg0: i32, %arg1: i32) -> (i32, i32, i32) {
    %c0_i32 = arith.constant 0 : i32
    %c0_i32_0 = arith.constant 0 : i32
    return %arg0, %c0_i32, %arg1 : i32, i32, i32
  }
}

</mosaic_0001>

<bundles_post_ra>
// kernel: out_layer_forward.1
= control target key start
LH: loop header
LB: loop body
LE: loop exit
PB: predicated region body
PF: predicated region fallthrough
CT: control target
= control target key end

     0   :  { %s482_s12 = smov 0   ;;  %s484_s13 = smov 0   ;;  %s521_s0 = inlined_call_operand.vmem [shape: f32[2,4,256], index: 0, kind: input, shape index: {}]   ;;  %s522_s1 = inlined_call_operand.vmem [shape: f32[3,4], index: 1, kind: input, shape index: {}]   ;;  %s523_s2 = inlined_call_operand.vmem [shape: f32[3,1], index: 2, kind: input, shape index: {}]   ;;  %s524_s3 = inlined_call_operand.vmem [shape: f32[2,3,256], index: 3, kind: output, shape index: {}]  }
   0x1   :  { %s486_s14 = smov 0  }
   0x2 LB: > { %s25_s15 = sadd.s32 1, %s454_s13  ;;  %p396_p0 = scmp.ge.s32.totalorder %s458_s14, 1  ;;  %s458_s14 = sphi %s486_s14, %s13_s14   ;;  %s454_s13 = sphi %s484_s13, %s526_s13   ;;  %s450_s12 = sphi %s482_s12, %s525_s12  }
   0x3   : > { %p27_p1 = scmp.ge.s32.totalorder %s25_s15, 2  ;;  %p158_p2 = scmp.lt.s32.totalorder %s458_s14, 3 }
   0x5   : > { %s528_s15 = smov (%p27_p1, %s25_s15), 0  ;;  %p159_p3 = pnand %p396_p0, %p158_p2 }
   0x6   : > { %p191_p4 = scmp.lt.s32.totalorder (!%p159_p3), %s450_s12, 1  ;;  %v460_v0 = vmov (!%p159_p3), 0.0   ;;  %v212_v1 = vld [vmem:[%s523_s2] sm:$0x7] (!%p159_p3)  ;;  %v461_v2 = vmov (!%p159_p3), 0   ;;  %vm224_vm0 = vcmask (!%p159_p3), 1043456  }
   0x7   : > { %162 = sbr.rel (%p159_p3) target bundleno = 240 (0xf0), region = 32  ;;  %293 = vmatprep.mubr.f32.mxu0 (!%p159_p3), %v460_v0  ;;  %434 = vset.pattern.permute.xlu0 (!%p159_p3), %v461_v2  ;;  %v210_v5 = vld [vmem:[%s522_s1] sm:$0x7] (!%p159_p3)  ;;  %vm220_vm1 = vcmask (!%p159_p3), 31744  }
   0x8   : > { %215 = vperm.xlu0 (!%p159_p3), %434, %v212_v1  }
   0xe   : > { %s530_s12 = smov (!%p191_p4, %s450_s12), 1 }
   0xf   : > { %s406_s18 = sshll.u32 %s530_s12, 3 }
  0x10   : > { %s198_s21 = scalar_lea.vmem %s521_s0, %s406_s18  ;;  %s208_s26 = scalar_lea.vmem %s524_s3, %s406_s18 }
  0x11   : > { %v211_v3 = vld [vmem:[%s198_s21] sm:$0xff] }
  0x12   : > { %v219_v4 = vcombine.high %v211_v3, %v211_v3 }
  0x14   : > { %401 = vmatprep.subr.msk.mxu0 %vm224_vm0, %v219_v4 }
  0x15   : > { %402 = vmatpush1.msk.msra.mxu0 %vm224_vm0, %v211_v3 }
  0x16   : > { %403 = vmatmul.mubr.msk.f32.vlgmr.msra.gmra.mrb[0].mxu0 %vm220_vm1, %v210_v5 }
  0x87   : > { %v216_v6 = vpop.permute.xlu0 %215 }
  0xe9   : > { %v295_v7 = vpop.f32.mrb[0].mxu0 }
  0xea   : > { %v296_v8 = vadd.f32 %v295_v7, %v216_v6  ;;  %v297_v9 = vpop.f32.mrb[1].mxu0 }
  0xeb   : > { %v298_v10 = vadd.f32 %v297_v9, %v216_v6 }
  0xed   : > { %v302_v11 = vcombine.low %v296_v8, %v298_v10 }
  0xef   : > { %304 = vst [vmem:[%s208_s26] sm:$0x77] %v302_v11 }
  0xf0 PF: > { %s13_s14 = sadd.s32 1, %s458_s14   ;;  %s525_s12 = smov %s454_s13 }
  0xf1   : > { %p10_p5 = scmp.ge.s32.totalorder %s13_s14, 4   ;;  %s526_s13 = smov %s528_s15 }
  0xf3   :  { %12 = sbr.rel (!%p10_p5) target bundleno = 2 (0x2), region = 62 }

</bundles_post_ra>
